<compile_context>
chip_gen: v5e
topology: v5e:2x2
jax: 0.10.0
libtpu: 0.0.40
codegen_flags: <defaults>
</compile_context>

<pallas_src>
import jax
import jax.numpy as jnp
from jax.experimental import pallas as pl
from jax.experimental.pallas import tpu as pltpu


def _prompt_assemble_kernel(prefix_ref, ctx_ref, suffix_ref, out_ref):
    # prefix_ref: (TILE_C, 1,     dim)   per-class SOS embeddings
    # ctx_ref:    (n_sets, n_ctx, dim)   learned context (resident, constant index_map)
    # suffix_ref: (TILE_C, n_sfx, dim)   per-class suffix embeddings
    # out_ref:    (TILE_C, n_sets, 1 + n_ctx + n_sfx, dim)
    tile_c, n_sets, _, dim = out_ref.shape
    n_ctx = ctx_ref.shape[1]

    # n_sets is small (4) and static -> unrolled Python loop.
    # Direct slice stores: no whole-block temporary, no concatenate, no spill
    # round trip. Loads inside the loop keep vreg live ranges short so Mosaic
    # streams vld->vst.
    for s in range(n_sets):
        out_ref[:, s, 0:1, :] = prefix_ref[...]
        out_ref[:, s, 1:1 + n_ctx, :] = jnp.broadcast_to(
            ctx_ref[s][None, :, :], (tile_c, n_ctx, dim)
        )
        out_ref[:, s, 1 + n_ctx:, :] = suffix_ref[...]


def _vmem_capacity_bytes() -> int:
    """Physical VMEM per core; fall back to the smallest (v7x, 64 MiB)."""
    try:
        return int(pltpu.get_tpu_info().vmem_capacity_bytes)
    except Exception:
        return 64 * 1024 * 1024


def prompt_learner_forward(ctx, token_prefix, token_suffix):
    """Pallas implementation of PromptLearner.forward (class_token_position='end').

    ctx:          (n_sets=4, n_ctx, ctx_dim)
    token_prefix: (n_cls, 1, ctx_dim)
    token_suffix: (n_cls, n_sfx, ctx_dim)
    returns:      (n_cls, n_sets, 1 + n_ctx + n_sfx, ctx_dim)
    """
    n_sets, n_ctx, ctx_dim = ctx.shape
    n_cls = token_prefix.shape[0]
    n_sfx = token_suffix.shape[1]
    seq_len = 1 + n_ctx + n_sfx
    dtype = ctx.dtype
    itemsize = jnp.dtype(dtype).itemsize

    vmem_capacity = _vmem_capacity_bytes()

    # --- generation-aware class tiling --------------------------------------
    per_class_out_bytes = n_sets * seq_len * ctx_dim * itemsize
    # ~8 MiB output blocks on v7x (64 MiB VMEM), ~16 MiB on v5e/v6e (128 MiB).
    target_out_bytes = max(vmem_capacity // 8, 1 << 20)
    tile_c = max(1, target_out_bytes // max(per_class_out_bytes, 1))
    if n_cls >= 2:
        # Guarantee >= 2 grid steps so the class axis can shard across the two
        # v7x TensorCores (no effect on single-TC v5e/v6e, negligible cost).
        tile_c = min(tile_c, pl.cdiv(n_cls, 2))
    tile_c = int(min(tile_c, n_cls))
    num_steps = pl.cdiv(n_cls, tile_c)  # last block may be partial; Pallas masks it

    # --- VMEM footprint / limit ----------------------------------------------
    out_block = tile_c * per_class_out_bytes
    prefix_block = tile_c * 1 * ctx_dim * itemsize
    suffix_block = tile_c * n_sfx * ctx_dim * itemsize
    ctx_block = n_sets * n_ctx * ctx_dim * itemsize
    footprint = 2 * (out_block + prefix_block + suffix_block + ctx_block)
    vmem_limit = int(
        min(
            max(int(1.5 * footprint), 16 * 1024 * 1024),
            min(48 * 1024 * 1024, int(0.75 * vmem_capacity)),
        )
    )

    # --- advisory cost: zero-FLOP, memory-bound copy (ctx counted once) ------
    out_bytes = n_cls * per_class_out_bytes
    in_bytes = (token_prefix.size + token_suffix.size + ctx.size) * itemsize
    cost = pl.CostEstimate(
        flops=0, transcendentals=0, bytes_accessed=int(in_bytes + out_bytes)
    )

    return pl.pallas_call(
        _prompt_assemble_kernel,
        out_shape=jax.ShapeDtypeStruct((n_cls, n_sets, seq_len, ctx_dim), dtype),
        grid_spec=pltpu.PrefetchScalarGridSpec(
            num_scalar_prefetch=0,
            grid=(num_steps,),
            in_specs=[
                # prefix: TILE_C classes per step
                pl.BlockSpec((tile_c, 1, ctx_dim), lambda c: (c, 0, 0)),
                # ctx: fully resident (constant block index -> single DMA)
                pl.BlockSpec((n_sets, n_ctx, ctx_dim), lambda c: (0, 0, 0)),
                # suffix: TILE_C classes per step
                pl.BlockSpec((tile_c, n_sfx, ctx_dim), lambda c: (c, 0, 0)),
            ],
            out_specs=pl.BlockSpec(
                (tile_c, n_sets, seq_len, ctx_dim), lambda c: (c, 0, 0, 0)
            ),
        ),
        compiler_params=pltpu.CompilerParams(
            dimension_semantics=("parallel",),
            vmem_limit_bytes=vmem_limit,
        ),
        cost_estimate=cost,
    )(token_prefix, ctx, token_suffix)


def prompt_learner_reference(ctx, token_prefix, token_suffix):
    """Pure-JAX reference mirroring the PyTorch forward."""
    n_cls = token_prefix.shape[0]
    n_sets = ctx.shape[0]
    ctx_b = jnp.broadcast_to(ctx[None], (n_cls,) + ctx.shape)
    prefix_b = jnp.broadcast_to(
        token_prefix[:, None], (n_cls, n_sets) + token_prefix.shape[1:]
    )
    suffix_b = jnp.broadcast_to(
        token_suffix[:, None], (n_cls, n_sets) + token_suffix.shape[1:]
    )
    return jnp.concatenate([prefix_b, ctx_b, suffix_b], axis=2)


if __name__ == "__main__":
    # Small, deterministic synthetic setup (no checkpoint / tokenizer):
    #   n_cls = 3 classes, n_ctx = 4 context tokens, ctx_dim = 128,
    #   total sequence length = 16 -> suffix length = 16 - 1 - n_ctx = 11.
    # n_cls = 3 with tile_c = 2 also exercises the padded final class block.
    n_cls, n_sets, n_ctx, ctx_dim = 3, 4, 4, 128
    total_seq = 16
    n_sfx = total_seq - 1 - n_ctx

    key = jax.random.PRNGKey(0)
    k_ctx, k_emb = jax.random.split(key)

    # ctx ~ N(0, 0.02^2), matching nn.init.normal_(ctx_vectors, std=0.02)
    ctx = 0.02 * jax.random.normal(k_ctx, (n_sets, n_ctx, ctx_dim), jnp.float32)

    # Synthetic "token embedding" of the tokenized prompts; prefix = first
    # token's embedding, suffix = tokens after the context slots.
    # TODO(synk): real CLIP tokenization + frozen token_embedding lookup has no
    # in-kernel equivalent here; a deterministic random embedding stands in.
    embedding = jax.random.normal(k_emb, (n_cls, total_seq, ctx_dim), jnp.float32)
    token_prefix = embedding[:, :1, :]
    token_suffix = embedding[:, 1 + n_ctx:, :]

    prompts = prompt_learner_forward(ctx, token_prefix, token_suffix)
    prompts = jax.block_until_ready(prompts)

    ref = prompt_learner_reference(ctx, token_prefix, token_suffix)
    assert prompts.shape == (n_cls, n_sets, total_seq, ctx_dim), prompts.shape
    assert prompts.dtype == jnp.float32
    assert jnp.allclose(prompts, ref), "Pallas output mismatch vs reference"

    print("KERNEL_OK")
</pallas_src>

<mosaic_0001>
module attributes {stable_mosaic.version = 11 : i64} {
  func.func @_prompt_assemble_kernel(%arg0: i32, %arg1: memref<2x1x128xf32, #tpu.memory_space<vmem>>, %arg2: memref<4x4x128xf32, #tpu.memory_space<vmem>>, %arg3: memref<2x11x128xf32, #tpu.memory_space<vmem>>, %arg4: memref<2x4x16x128xf32, #tpu.memory_space<vmem>>) attributes {dimension_semantics = [#tpu.dimension_semantics<parallel>], iteration_bounds = array<i64: 2>, scalar_prefetch = 0 : i64, scratch_operands = 0 : i64, tpu.core_type = #tpu.core_type<tc>, window_params = [{transform_indices = @transform_0, window_bounds = array<i64: 2, 1, 128>}, {pipeline_mode = #tpu.pipeline_mode<synchronous>, transform_indices = @transform_1, window_bounds = array<i64: 4, 4, 128>}, {transform_indices = @transform_2, window_bounds = array<i64: 2, 11, 128>}, {transform_indices = @transform_3, window_bounds = array<i64: 2, 4, 16, 128>}]} {
    %c0 = arith.constant 0 : index
    %c0_0 = arith.constant 0 : index
    %c0_1 = arith.constant 0 : index
    %0 = vector.load %arg1[%c0, %c0_0, %c0_1] : memref<2x1x128xf32, #tpu.memory_space<vmem>>, vector<2x1x128xf32>
    %c0_2 = arith.constant 0 : index
    %c0_3 = arith.constant 0 : index
    %c0_4 = arith.constant 0 : index
    %c0_5 = arith.constant 0 : index
    %1 = vector.load %arg4[%c0_2, %c0_3, %c0_4, %c0_5] : memref<2x4x16x128xf32, #tpu.memory_space<vmem>>, vector<2x1x1x128xf32>
    %2 = vector.shape_cast %1 : vector<2x1x1x128xf32> to vector<2x1x128xf32>
    %3 = vector.shape_cast %0 : vector<2x1x128xf32> to vector<2x1x1x128xf32>
    tpu.vector_store %arg4[%c0_2, %c0_3, %c0_4, %c0_5], %3 {strides = array<i32>} : memref<2x4x16x128xf32, #tpu.memory_space<vmem>>, vector<2x1x1x128xf32>,
    %c0_6 = arith.constant 0 : index
    %c0_7 = arith.constant 0 : index
    %c0_8 = arith.constant 0 : index
    %4 = vector.load %arg2[%c0_6, %c0_7, %c0_8] : memref<4x4x128xf32, #tpu.memory_space<vmem>>, vector<1x4x128xf32>
    %5 = vector.shape_cast %4 : vector<1x4x128xf32> to vector<4x128xf32>
    %6 = vector.shape_cast %5 : vector<4x128xf32> to vector<1x4x128xf32>
    %7 = vector.shape_cast %6 : vector<1x4x128xf32> to vector<1x4x128xf32>
    %8 = vector.broadcast %7 : vector<1x4x128xf32> to vector<2x4x128xf32>
    %c0_9 = arith.constant 0 : index
    %c0_10 = arith.constant 0 : index
    %c1 = arith.constant 1 : index
    %c0_11 = arith.constant 0 : index
    %9 = vector.load %arg4[%c0_9, %c0_10, %c1, %c0_11] : memref<2x4x16x128xf32, #tpu.memory_space<vmem>>, vector<2x1x4x128xf32>
    %10 = vector.shape_cast %9 : vector<2x1x4x128xf32> to vector<2x4x128xf32>
    %11 = vector.shape_cast %8 : vector<2x4x128xf32> to vector<2x1x4x128xf32>
    tpu.vector_store %arg4[%c0_9, %c0_10, %c1, %c0_11], %11 {strides = array<i32>} : memref<2x4x16x128xf32, #tpu.memory_space<vmem>>, vector<2x1x4x128xf32>,
    %c0_12 = arith.constant 0 : index
    %c0_13 = arith.constant 0 : index
    %c0_14 = arith.constant 0 : index
    %12 = vector.load %arg3[%c0_12, %c0_13, %c0_14] : memref<2x11x128xf32, #tpu.memory_space<vmem>>, vector<2x11x128xf32>
    %c0_15 = arith.constant 0 : index
    %c0_16 = arith.constant 0 : index
    %c5 = arith.constant 5 : index
    %c0_17 = arith.constant 0 : index
    %13 = vector.load %arg4[%c0_15, %c0_16, %c5, %c0_17] : memref<2x4x16x128xf32, #tpu.memory_space<vmem>>, vector<2x1x11x128xf32>
    %14 = vector.shape_cast %13 : vector<2x1x11x128xf32> to vector<2x11x128xf32>
    %15 = vector.shape_cast %12 : vector<2x11x128xf32> to vector<2x1x11x128xf32>
    tpu.vector_store %arg4[%c0_15, %c0_16, %c5, %c0_17], %15 {strides = array<i32>} : memref<2x4x16x128xf32, #tpu.memory_space<vmem>>, vector<2x1x11x128xf32>,
    %c0_18 = arith.constant 0 : index
    %c0_19 = arith.constant 0 : index
    %c0_20 = arith.constant 0 : index
    %16 = vector.load %arg1[%c0_18, %c0_19, %c0_20] : memref<2x1x128xf32, #tpu.memory_space<vmem>>, vector<2x1x128xf32>
    %c0_21 = arith.constant 0 : index
    %c1_22 = arith.constant 1 : index
    %c0_23 = arith.constant 0 : index
    %c0_24 = arith.constant 0 : index
    %17 = vector.load %arg4[%c0_21, %c1_22, %c0_23, %c0_24] : memref<2x4x16x128xf32, #tpu.memory_space<vmem>>, vector<2x1x1x128xf32>
    %18 = vector.shape_cast %17 : vector<2x1x1x128xf32> to vector<2x1x128xf32>
    %19 = vector.shape_cast %16 : vector<2x1x128xf32> to vector<2x1x1x128xf32>
    tpu.vector_store %arg4[%c0_21, %c1_22, %c0_23, %c0_24], %19 {strides = array<i32>} : memref<2x4x16x128xf32, #tpu.memory_space<vmem>>, vector<2x1x1x128xf32>,
    %c1_25 = arith.constant 1 : index
    %c0_26 = arith.constant 0 : index
    %c0_27 = arith.constant 0 : index
    %20 = vector.load %arg2[%c1_25, %c0_26, %c0_27] : memref<4x4x128xf32, #tpu.memory_space<vmem>>, vector<1x4x128xf32>
    %21 = vector.shape_cast %20 : vector<1x4x128xf32> to vector<4x128xf32>
    %22 = vector.shape_cast %21 : vector<4x128xf32> to vector<1x4x128xf32>
    %23 = vector.shape_cast %22 : vector<1x4x128xf32> to vector<1x4x128xf32>
    %24 = vector.broadcast %23 : vector<1x4x128xf32> to vector<2x4x128xf32>
    %c0_28 = arith.constant 0 : index
    %c1_29 = arith.constant 1 : index
    %c1_30 = arith.constant 1 : index
    %c0_31 = arith.constant 0 : index
    %25 = vector.load %arg4[%c0_28, %c1_29, %c1_30, %c0_31] : memref<2x4x16x128xf32, #tpu.memory_space<vmem>>, vector<2x1x4x128xf32>
    %26 = vector.shape_cast %25 : vector<2x1x4x128xf32> to vector<2x4x128xf32>
    %27 = vector.shape_cast %24 : vector<2x4x128xf32> to vector<2x1x4x128xf32>
    tpu.vector_store %arg4[%c0_28, %c1_29, %c1_30, %c0_31], %27 {strides = array<i32>} : memref<2x4x16x128xf32, #tpu.memory_space<vmem>>, vector<2x1x4x128xf32>,
    %c0_32 = arith.constant 0 : index
    %c0_33 = arith.constant 0 : index
    %c0_34 = arith.constant 0 : index
    %28 = vector.load %arg3[%c0_32, %c0_33, %c0_34] : memref<2x11x128xf32, #tpu.memory_space<vmem>>, vector<2x11x128xf32>
    %c0_35 = arith.constant 0 : index
    %c1_36 = arith.constant 1 : index
    %c5_37 = arith.constant 5 : index
    %c0_38 = arith.constant 0 : index
    %29 = vector.load %arg4[%c0_35, %c1_36, %c5_37, %c0_38] : memref<2x4x16x128xf32, #tpu.memory_space<vmem>>, vector<2x1x11x128xf32>
    %30 = vector.shape_cast %29 : vector<2x1x11x128xf32> to vector<2x11x128xf32>
    %31 = vector.shape_cast %28 : vector<2x11x128xf32> to vector<2x1x11x128xf32>
    tpu.vector_store %arg4[%c0_35, %c1_36, %c5_37, %c0_38], %31 {strides = array<i32>} : memref<2x4x16x128xf32, #tpu.memory_space<vmem>>, vector<2x1x11x128xf32>,
    %c0_39 = arith.constant 0 : index
    %c0_40 = arith.constant 0 : index
    %c0_41 = arith.constant 0 : index
    %32 = vector.load %arg1[%c0_39, %c0_40, %c0_41] : memref<2x1x128xf32, #tpu.memory_space<vmem>>, vector<2x1x128xf32>
    %c0_42 = arith.constant 0 : index
    %c2 = arith.constant 2 : index
    %c0_43 = arith.constant 0 : index
    %c0_44 = arith.constant 0 : index
    %33 = vector.load %arg4[%c0_42, %c2, %c0_43, %c0_44] : memref<2x4x16x128xf32, #tpu.memory_space<vmem>>, vector<2x1x1x128xf32>
    %34 = vector.shape_cast %33 : vector<2x1x1x128xf32> to vector<2x1x128xf32>
    %35 = vector.shape_cast %32 : vector<2x1x128xf32> to vector<2x1x1x128xf32>
    tpu.vector_store %arg4[%c0_42, %c2, %c0_43, %c0_44], %35 {strides = array<i32>} : memref<2x4x16x128xf32, #tpu.memory_space<vmem>>, vector<2x1x1x128xf32>,
    %c2_45 = arith.constant 2 : index
    %c0_46 = arith.constant 0 : index
    %c0_47 = arith.constant 0 : index
    %36 = vector.load %arg2[%c2_45, %c0_46, %c0_47] : memref<4x4x128xf32, #tpu.memory_space<vmem>>, vector<1x4x128xf32>
    %37 = vector.shape_cast %36 : vector<1x4x128xf32> to vector<4x128xf32>
    %38 = vector.shape_cast %37 : vector<4x128xf32> to vector<1x4x128xf32>
    %39 = vector.shape_cast %38 : vector<1x4x128xf32> to vector<1x4x128xf32>
    %40 = vector.broadcast %39 : vector<1x4x128xf32> to vector<2x4x128xf32>
    %c0_48 = arith.constant 0 : index
    %c2_49 = arith.constant 2 : index
    %c1_50 = arith.constant 1 : index
    %c0_51 = arith.constant 0 : index
    %41 = vector.load %arg4[%c0_48, %c2_49, %c1_50, %c0_51] : memref<2x4x16x128xf32, #tpu.memory_space<vmem>>, vector<2x1x4x128xf32>
    %42 = vector.shape_cast %41 : vector<2x1x4x128xf32> to vector<2x4x128xf32>
    %43 = vector.shape_cast %40 : vector<2x4x128xf32> to vector<2x1x4x128xf32>
    tpu.vector_store %arg4[%c0_48, %c2_49, %c1_50, %c0_51], %43 {strides = array<i32>} : memref<2x4x16x128xf32, #tpu.memory_space<vmem>>, vector<2x1x4x128xf32>,
    %c0_52 = arith.constant 0 : index
    %c0_53 = arith.constant 0 : index
    %c0_54 = arith.constant 0 : index
    %44 = vector.load %arg3[%c0_52, %c0_53, %c0_54] : memref<2x11x128xf32, #tpu.memory_space<vmem>>, vector<2x11x128xf32>
    %c0_55 = arith.constant 0 : index
    %c2_56 = arith.constant 2 : index
    %c5_57 = arith.constant 5 : index
    %c0_58 = arith.constant 0 : index
    %45 = vector.load %arg4[%c0_55, %c2_56, %c5_57, %c0_58] : memref<2x4x16x128xf32, #tpu.memory_space<vmem>>, vector<2x1x11x128xf32>
    %46 = vector.shape_cast %45 : vector<2x1x11x128xf32> to vector<2x11x128xf32>
    %47 = vector.shape_cast %44 : vector<2x11x128xf32> to vector<2x1x11x128xf32>
    tpu.vector_store %arg4[%c0_55, %c2_56, %c5_57, %c0_58], %47 {strides = array<i32>} : memref<2x4x16x128xf32, #tpu.memory_space<vmem>>, vector<2x1x11x128xf32>,
    %c0_59 = arith.constant 0 : index
    %c0_60 = arith.constant 0 : index
    %c0_61 = arith.constant 0 : index
    %48 = vector.load %arg1[%c0_59, %c0_60, %c0_61] : memref<2x1x128xf32, #tpu.memory_space<vmem>>, vector<2x1x128xf32>
    %c0_62 = arith.constant 0 : index
    %c3 = arith.constant 3 : index
    %c0_63 = arith.constant 0 : index
    %c0_64 = arith.constant 0 : index
    %49 = vector.load %arg4[%c0_62, %c3, %c0_63, %c0_64] : memref<2x4x16x128xf32, #tpu.memory_space<vmem>>, vector<2x1x1x128xf32>
    %50 = vector.shape_cast %49 : vector<2x1x1x128xf32> to vector<2x1x128xf32>
    %51 = vector.shape_cast %48 : vector<2x1x128xf32> to vector<2x1x1x128xf32>
    tpu.vector_store %arg4[%c0_62, %c3, %c0_63, %c0_64], %51 {strides = array<i32>} : memref<2x4x16x128xf32, #tpu.memory_space<vmem>>, vector<2x1x1x128xf32>,
    %c3_65 = arith.constant 3 : index
    %c0_66 = arith.constant 0 : index
    %c0_67 = arith.constant 0 : index
    %52 = vector.load %arg2[%c3_65, %c0_66, %c0_67] : memref<4x4x128xf32, #tpu.memory_space<vmem>>, vector<1x4x128xf32>
    %53 = vector.shape_cast %52 : vector<1x4x128xf32> to vector<4x128xf32>
    %54 = vector.shape_cast %53 : vector<4x128xf32> to vector<1x4x128xf32>
    %55 = vector.shape_cast %54 : vector<1x4x128xf32> to vector<1x4x128xf32>
    %56 = vector.broadcast %55 : vector<1x4x128xf32> to vector<2x4x128xf32>
    %c0_68 = arith.constant 0 : index
    %c3_69 = arith.constant 3 : index
    %c1_70 = arith.constant 1 : index
    %c0_71 = arith.constant 0 : index
    %57 = vector.load %arg4[%c0_68, %c3_69, %c1_70, %c0_71] : memref<2x4x16x128xf32, #tpu.memory_space<vmem>>, vector<2x1x4x128xf32>
    %58 = vector.shape_cast %57 : vector<2x1x4x128xf32> to vector<2x4x128xf32>
    %59 = vector.shape_cast %56 : vector<2x4x128xf32> to vector<2x1x4x128xf32>
    tpu.vector_store %arg4[%c0_68, %c3_69, %c1_70, %c0_71], %59 {strides = array<i32>} : memref<2x4x16x128xf32, #tpu.memory_space<vmem>>, vector<2x1x4x128xf32>,
    %c0_72 = arith.constant 0 : index
    %c0_73 = arith.constant 0 : index
    %c0_74 = arith.constant 0 : index
    %60 = vector.load %arg3[%c0_72, %c0_73, %c0_74] : memref<2x11x128xf32, #tpu.memory_space<vmem>>, vector<2x11x128xf32>
    %c0_75 = arith.constant 0 : index
    %c3_76 = arith.constant 3 : index
    %c5_77 = arith.constant 5 : index
    %c0_78 = arith.constant 0 : index
    %61 = vector.load %arg4[%c0_75, %c3_76, %c5_77, %c0_78] : memref<2x4x16x128xf32, #tpu.memory_space<vmem>>, vector<2x1x11x128xf32>
    %62 = vector.shape_cast %61 : vector<2x1x11x128xf32> to vector<2x11x128xf32>
    %63 = vector.shape_cast %60 : vector<2x11x128xf32> to vector<2x1x11x128xf32>
    tpu.vector_store %arg4[%c0_75, %c3_76, %c5_77, %c0_78], %63 {strides = array<i32>} : memref<2x4x16x128xf32, #tpu.memory_space<vmem>>, vector<2x1x11x128xf32>,
    return
  }
  func.func @transform_0(%arg0: i32) -> (i32, i32, i32) {
    %c0_i32 = arith.constant 0 : i32
    %c0_i32_0 = arith.constant 0 : i32
    %c0_i32_1 = arith.constant 0 : i32
    return %arg0, %c0_i32, %c0_i32_0 : i32, i32, i32
  }
  func.func @transform_1(%arg0: i32) -> (i32, i32, i32) {
    %c0_i32 = arith.constant 0 : i32
    %c0_i32_0 = arith.constant 0 : i32
    %c0_i32_1 = arith.constant 0 : i32
    %c0_i32_2 = arith.constant 0 : i32
    return %c0_i32, %c0_i32_0, %c0_i32_1 : i32, i32, i32
  }
  func.func @transform_2(%arg0: i32) -> (i32, i32, i32) {
    %c0_i32 = arith.constant 0 : i32
    %c0_i32_0 = arith.constant 0 : i32
    %c0_i32_1 = arith.constant 0 : i32
    return %arg0, %c0_i32, %c0_i32_0 : i32, i32, i32
  }
  func.func @transform_3(%arg0: i32) -> (i32, i32, i32, i32) {
    %c0_i32 = arith.constant 0 : i32
    %c0_i32_0 = arith.constant 0 : i32
    %c0_i32_1 = arith.constant 0 : i32
    %c0_i32_2 = arith.constant 0 : i32
    return %arg0, %c0_i32, %c0_i32_0, %c0_i32_1 : i32, i32, i32, i32
  }
}

</mosaic_0001>

<bundles_post_ra>
// kernel: tpu_custom_call.1
= control target key start
LH: loop header
LB: loop body
LE: loop exit
PB: predicated region body
PF: predicated region fallthrough
CT: control target
= control target key end

     0   :  { %8 = vsyncpa [#allocation3], 0  ;;  %s791_s0 = inlined_call_operand.vmem [shape: f32[3,1,128], index: 0, kind: input, shape index: {}]   ;;  %s792_s1 = inlined_call_operand.vmem [shape: f32[4,4,128], index: 1, kind: input, shape index: {}]   ;;  %s793_s2 = inlined_call_operand.vmem [shape: f32[3,11,128], index: 2, kind: input, shape index: {}]   ;;  %s794_s3 = inlined_call_operand.hbm [shape: f32[3,4,16,128], index: 3, kind: output, shape index: {}]  }
   0x1   :  { %10 = vsyncpa [#allocation3 + $0x1], 0  ;;  %s598_s12 = smov 0   ;;  %s600_s13 = smov 0  }
   0x2   :  { %s602_s14 = smov 0   ;;  %s604_s15 = smov 0  }
   0x3 LB: > { %s619_s16 = sadd.s32 4294967295, %s573_s15   ;;  %s404_s17 = sadd.s32 4294967294, %s573_s15   ;;  %s573_s15 = sphi %s604_s15, %s801_s15   ;;  %s569_s14 = sphi %s602_s14, %s800_s14   ;;  %s565_s13 = sphi %s600_s13, %s799_s13   ;;  %s561_s12 = sphi %s598_s12, %s798_s12  }
   0x4   : > { %s623_s18 = sadd.s32 1, %s573_s15   ;;  %s96_s19 = sadd.s32 1, %s569_s14 }
   0x5   : > { %s93_s20 = ssub.s32 %s573_s15, %s623_s18  ;;  %p106_p0 = scmp.ne.s32.totalorder %s569_s14, %s565_s13 }
   0x6   : > { %p94_p1 = scmp.eq.s32.totalorder %s93_s20, 0  ;;  %p107_p2 = scmp.eq.s32.totalorder %s619_s16, 1 }
   0x7   : > { %p112_p3 = scmp.ne.s32.totalorder %s565_s13, %s561_s12  ;;  %p113_p4 = scmp.eq.s32.totalorder %s404_s17, 1 }
   0x8   : > { %s634_s21 = scalar_select %p94_p1, %s569_s14, %s96_s19  }
   0x9   : > { %p636_p5 = por %p107_p2, %p106_p0  ;;  %p640_p6 = por %p113_p4, %p112_p3 }
   0xa   : > { %p407_p7 = scmp.ge.s32.totalorder %s573_s15, 1  ;;  %p168_p8 = scmp.lt.s32.totalorder %s573_s15, 3 }
   0xc   : > { %p169_p9 = pnand %p407_p7, %p168_p8 }
   0xd   : > { %s202_s24 = sand.u32 (!%p169_p9), 1, %s565_s13   ;;  %s648_s25 = sshll.u32 (!%p169_p9), %s619_s16, 1 }
   0xe   : > { %172 = sbr.rel (%p169_p9) target bundleno = 83 (0x53), region = 32  ;;  %s408_s28 = sshll.u32 (!%p169_p9), %s202_s24, 7 }
   0xf   : > { %p209_p10 = scmp.lt.s32.totalorder (!%p169_p9), %s648_s25, 2  ;;  %s660_s5 = scalar_lea.vmem (!%p169_p9), [#allocation2], %s408_s28 }
  0x10   : > { %s730_s28 = scalar_lea.sflag (!%p169_p9), [#allocation3], %s202_s24 }
  0x13   : > { %v244_v0 = vld [vmem:[%s792_s1] sm:$0xf]  ;;  %v415_v1 = vld [vmem:[%s792_s1 + $0x4] sm:$0xf]  ;;  %s210_s4 = scalar_select %p209_p10, %s648_s25, 2 }
  0x14   : > { %245 = vst [vmem:[%s660_s5 + $0x1] sm:$0xf] %v244_v0  ;;  %v424_v14 = vld [vmem:[%s792_s1 + $0x8] sm:$0xf]  ;;  %v433_v19 = vld [vmem:[%s792_s1 + $0xc] sm:$0xf] }
  0x15   : > { %246 = vst [vmem:[%s660_s5 + $0x41] sm:$0xf] %v244_v0  ;;  %s667_s8 = scalar_lea.vmem %s791_s0, %s210_s4  ;;  %s453_s9 = sshll.u32 %s210_s4, 4 }
  0x16   : > { %416 = vst [vmem:[%s660_s5 + $0x11] sm:$0xf] %v415_v1  ;;  %s673_s17 = scalar_lea.vmem %s793_s2, %s453_s9  ;;  %v240_v2 = vld [vmem:[%s667_s8] sm:$0x1]  ;;  %v241_v3 = vld [vmem:[%s667_s8 + $0x1] sm:$0x1] }
  0x17   : > { %242 = vst [vmem:[%s660_s5] sm:$0x1] %v240_v2  ;;  %v247_v4 = vld [vmem:[%s673_s17] sm:$0xff]  ;;  %v248_v5 = vld [vmem:[%s673_s17 + $0x8] sm:$0x7]  ;;  %v249_v6 = vld [vmem:[%s673_s17 + $0x10] sm:$0xff]  ;;  %s315_s29 = ssub.s32 (%p636_p5), 3, %s648_s25 }
  0x18   : > { %243 = vst [vmem:[%s660_s5 + $0x40] sm:$0x1] %v241_v3  ;;  %v250_v7 = vld [vmem:[%s673_s17 + $0x18] sm:$0x7]  ;;  %v255_v8 = vld [vmem:[%s667_s8] sm:$0x1] }
  0x19   : > { %251 = vst [vmem:[%s660_s5 + $0x5] sm:$0xff] %v247_v4  ;;  %v256_v9 = vld [vmem:[%s667_s8 + $0x1] sm:$0x1]  ;;  %v265_v10 = vld [vmem:[%s673_s17 + $0x8] sm:$0x7]  ;;  %p316_p11 = scmp.lt.s32.totalorder (%p636_p5), %s315_s29, 2 }
  0x1a   : > { %252 = vst [vmem:[%s660_s5 + $0xd] sm:$0x7] %v248_v5  ;;  %v267_v11 = vld [vmem:[%s673_s17 + $0x18] sm:$0x7]  ;;  %v272_v12 = vld [vmem:[%s667_s8] sm:$0x1] }
  0x1b   : > { %253 = vst [vmem:[%s660_s5 + $0x45] sm:$0xff] %v249_v6  ;;  %v273_v13 = vld [vmem:[%s667_s8 + $0x1] sm:$0x1]  ;;  %v282_v15 = vld [vmem:[%s673_s17 + $0x8] sm:$0x7] }
  0x1c   : > { %254 = vst [vmem:[%s660_s5 + $0x4d] sm:$0x7] %v250_v7  ;;  %v284_v16 = vld [vmem:[%s673_s17 + $0x18] sm:$0x7]  ;;  %v289_v17 = vld [vmem:[%s667_s8] sm:$0x1] }
  0x1d   : > { %413 = vst [vmem:[%s660_s5 + $0x10] sm:$0x1] %v255_v8  ;;  %v290_v18 = vld [vmem:[%s667_s8 + $0x1] sm:$0x1]  ;;  %v299_v20 = vld [vmem:[%s673_s17 + $0x8] sm:$0x7] }
  0x1e   : > { %414 = vst [vmem:[%s660_s5 + $0x50] sm:$0x1] %v256_v9  ;;  %v301_v21 = vld [vmem:[%s673_s17 + $0x18] sm:$0x7] }
  0x1f   : > { %417 = vst [vmem:[%s660_s5 + $0x51] sm:$0xf] %v415_v1 }
  0x20   : > { %418 = vst [vmem:[%s660_s5 + $0x15] sm:$0xff] %v247_v4 }
  0x21   : > { %419 = vst [vmem:[%s660_s5 + $0x1d] sm:$0x7] %v265_v10 }
  0x22   : > { %420 = vst [vmem:[%s660_s5 + $0x55] sm:$0xff] %v249_v6 }
  0x23   : > { %421 = vst [vmem:[%s660_s5 + $0x5d] sm:$0x7] %v267_v11 }
  0x24   : > { %422 = vst [vmem:[%s660_s5 + $0x20] sm:$0x1] %v272_v12 }
  0x25   : > { %423 = vst [vmem:[%s660_s5 + $0x60] sm:$0x1] %v273_v13 }
  0x26   : > { %425 = vst [vmem:[%s660_s5 + $0x21] sm:$0xf] %v424_v14 }
  0x27   : > { %426 = vst [vmem:[%s660_s5 + $0x61] sm:$0xf] %v424_v14 }
  0x28   : > { %427 = vst [vmem:[%s660_s5 + $0x25] sm:$0xff] %v247_v4 }
  0x29   : > { %428 = vst [vmem:[%s660_s5 + $0x2d] sm:$0x7] %v282_v15 }
  0x2a   : > { %429 = vst [vmem:[%s660_s5 + $0x65] sm:$0xff] %v249_v6 }
  0x2b   : > { %430 = vst [vmem:[%s660_s5 + $0x6d] sm:$0x7] %v284_v16 }
  0x2c   : > { %431 = vst [vmem:[%s660_s5 + $0x30] sm:$0x1] %v289_v17 }
  0x2d   : > { %432 = vst [vmem:[%s660_s5 + $0x70] sm:$0x1] %v290_v18 }
  0x2e   : > { %434 = vst [vmem:[%s660_s5 + $0x31] sm:$0xf] %v433_v19 }
  0x2f   : > { %435 = vst [vmem:[%s660_s5 + $0x71] sm:$0xf] %v433_v19  ;;  %313 = sbr.rel (!%p636_p5) target bundleno = 83 (0x53), region = 36 }
  0x30   : > { %436 = vst [vmem:[%s660_s5 + $0x35] sm:$0xff] %v247_v4 }
  0x31   : > { %437 = vst [vmem:[%s660_s5 + $0x3d] sm:$0x7] %v299_v20 }
  0x32   : > { %438 = vst [vmem:[%s660_s5 + $0x75] sm:$0xff] %v249_v6 }
  0x33   : > { %439 = vst [vmem:[%s660_s5 + $0x7d] sm:$0x7] %v301_v21 }
  0x34   : > { %s803_s29 = smov (!%p316_p11, %s315_s29), 2 }
  0x35   : > { %s455_s30 = sshll.u32 %s803_s29, 6 }
  0x36   : > { %s321_s4 = ssub.s32 128, %s455_s30 }
  0x37   : > { %s322_s6 = sshll.u32 %s321_s4, 4 }
  0x38   : > { %323 = vsyncadd %s730_s28, %s322_s6  ;;  %p739_p12 = scmp.ne.s32.totalorder %s455_s30, 0  ;;  %s457_s22 = sshll.u32 %s619_s16, 7 }
  0x39   : > { %s327_s8 = scalar_lea.hbm %s794_s3, %s457_s22  ;;  %s330_s9 = sshll.u32 %s660_s5, 4  ;;  %s748_s9 = int_to_ptr.vmem [resolvable:$true] %s330_s9 }
  0x3a   : > { %s332_s10 = sshll.u32 %s327_s8, 4  ;;  %s459_s11 = sshll.u32 %s803_s29, 10  ;;  %s750_s10 = int_to_ptr.hbm [resolvable:$true] %s332_s10 }
  0x3b   : > { %s500_s17 = sshra.s32 %s748_s9, 4  ;;  %s502_s19 = sshrl.u32 %s459_s11, 4  ;;  %s501_s17 = int_to_ptr.vmem [resolvable:$true] %s500_s17 }
  0x3c   : > { %s507_s20 = scalar_lea.vmem %s501_s17, %s502_s19  ;;  %s575_s16 = smov [#allocation2]  }
  0x3d   : > { %p508_p13 = scmp.ne.s32.totalorder %s501_s17, %s507_s20  ;;  %s511_s26 = scalar_lea.vmem %s575_s16, 256 }
  0x3e   : > { %p513_p2 = scmp.lt.s32.totalorder %s511_s26, %s507_s20 }
  0x3f   : > { %p509_p0 = pnand %p508_p13, %p739_p12 }
  0x41   : > { %p510_p1 = pneg %p509_p0 }
  0x43   : > { %p515_p3 = pnand %p513_p2, %p510_p1 }
  0x45   : > { %518 = shalt.err (!%p515_p3)
}
  0x46   : > { %s519_s5 = sshra.s32 %s750_s10, 4  ;;  %s530_s6 = scalar_lea.hbm %s794_s3, 192  ;;  %s520_s5 = int_to_ptr.hbm [resolvable:$true] %s519_s5 }
  0x47   : > { %s526_s27 = scalar_lea.hbm %s520_s5, %s502_s19  ;;  %p531_p8 = scmp.lt.s32.totalorder %s520_s5, %s794_s3 }
  0x48   : > { %p527_p4 = scmp.ne.s32.totalorder %s520_s5, %s526_s27  ;;  %p532_p9 = scmp.lt.s32.totalorder %s530_s6, %s526_s27 }
  0x4a   : > { %p528_p5 = pnand %p527_p4, %p739_p12  ;;  %p533_p10 = por %p532_p9, %p531_p8 }
  0x4c   : > { %p529_p7 = pneg %p528_p5 }
  0x4e   : > { %p534_p11 = pnand %p533_p10, %p529_p7 }
  0x50   : > { %537 = shalt.err (!%p534_p11)
}
  0x51   : > { %s576_s25 = smov 128   ;;  %s577_s8 = smov 8  }
  0x52   : > { %338 = dma.vmem_to_hbm [thread:$0]  (%p739_p12), %s748_s9, %s459_s11, %s750_s10, %s730_s28, %s576_s25, %s576_s25, %s577_s8  }
  0x53 PF: > { %p465_p13 = scmp.ge.s32.totalorder %s573_s15, 2  ;;  %s347_s17 = sand.u32 1, %s561_s12  }
  0x54   : > { %s348_s19 = scalar_lea.sflag [#allocation3], %s347_s17 }
  0x55   : > { %p462_p0 = pnand %p465_p13, %p640_p6 }
  0x57   : > { %p463_p1 = pneg %p462_p0 }
  0x59   : > { %556 = dma.done.wait (%p463_p1), %s348_s19, 2048  }
  0x5a   : > { %558 = vsyncadd (%p463_p1), %s348_s19, 4294965248  ;;  %p13_p2 = scmp.ge.s32.totalorder %s623_s18, 4   ;;  %s798_s12 = smov %s565_s13 }
  0x5b   : > { %s799_s13 = smov %s569_s14  ;;  %s800_s14 = smov %s634_s21 }
  0x5c   : > { %s801_s15 = smov %s623_s18  ;;  %15 = sbr.rel (!%p13_p2) target bundleno = 3 (0x3), region = 76 }
  0x61   :  { %354 = vsyncpa [#allocation3], 1 }
  0x62   :  { %356 = vsyncpa [#allocation3 + $0x1], 1 }

</bundles_post_ra>
